<compile_context>
chip_gen: v7x
topology: tpu7x:2x2x1
jax: 0.10.0
libtpu: 0.0.40
codegen_flags: <defaults>
</compile_context>

<pallas_src>
import functools

import numpy as np
import jax
import jax.numpy as jnp
from jax import lax
from jax.experimental import pallas as pl
from jax.experimental.pallas import tpu as pltpu


BINS = (1, 2, 3, 6)
_S2 = tuple(b * b for b in BINS)                                  # (1, 4, 9, 36)
_S2_OFF = tuple(int(v) for v in np.cumsum((0,) + _S2)[:-1])       # (0, 1, 5, 14)
_S2_TOTAL = int(sum(_S2))                                         # 50
_LANE = 128
_S2_PAD = _LANE * ((_S2_TOTAL + _LANE - 1) // _LANE)              # 128

_CT_CANDIDATES = (512, 256, 128, 64, 32, 16, 8)


def _round_up(x, m):
    return (x + m - 1) // m * m


# ---------------------------------------------------------------------------
# operator-matrix construction (host-side, float64, cached per (H, W))
# ---------------------------------------------------------------------------
def _adaptive_pool_matrix(in_size, out_size):
    """P[i, h]: pooled[i] = sum_h P[i, h] * x[h]  (exact PyTorch AdaptiveAvgPool)."""
    P = np.zeros((out_size, in_size), dtype=np.float64)
    for i in range(out_size):
        start = (i * in_size) // out_size
        end = -((-(i + 1) * in_size) // out_size)                 # ceil((i+1)*in/out)
        P[i, start:end] = 1.0 / (end - start)
    return P


def _bilinear_up_matrix(out_size, in_size):
    """U[h, i]: up[h] = sum_i U[h, i] * y[i]  (bilinear, align_corners=True)."""
    U = np.zeros((out_size, in_size), dtype=np.float64)
    if in_size == 1:
        U[:, 0] = 1.0
        return U
    if out_size == 1:
        U[0, 0] = 1.0
        return U
    scale = (in_size - 1) / (out_size - 1)
    for h in range(out_size):
        src = h * scale
        i0 = min(int(np.floor(src)), in_size - 1)
        i1 = min(i0 + 1, in_size - 1)
        frac = src - i0
        U[h, i0] += 1.0 - frac
        U[h, i1] += frac
    return U


def _build_fused_operators(H, W):
    """Concatenated, lane-padded pool / upsample operators for all four bins.

    Pmat_all : (HW_pad, 128)  pooled_all = x2d @ Pmat_all
    Umat_all : (128, HW_pad)  feat       = (relu(conv) * mask) @ Umat_all
    Zero-padded rows/cols contribute nothing, so padding is exact.
    """
    HW = H * W
    HW_pad = _round_up(HW, _LANE)
    Pmat = np.zeros((HW_pad, _S2_PAD), dtype=np.float64)
    Umat = np.zeros((_S2_PAD, HW_pad), dtype=np.float64)
    for s, off in zip(BINS, _S2_OFF):
        Ph = _adaptive_pool_matrix(H, s)
        Pw = _adaptive_pool_matrix(W, s)
        Uh = _bilinear_up_matrix(H, s)
        Uw = _bilinear_up_matrix(W, s)
        Pmat[:HW, off:off + s * s] = np.kron(Ph, Pw).T
        Umat[off:off + s * s, :HW] = np.kron(Uh, Uw).T
    return jnp.asarray(Pmat, jnp.float32), jnp.asarray(Umat, jnp.float32)


# ---------------------------------------------------------------------------
# VMEM-aware tiling selection
# ---------------------------------------------------------------------------
def _vmem_capacity_bytes():
    try:
        info = pltpu.get_tpu_info()
        cap = getattr(info, "vmem_capacity_bytes", None)
        if cap:
            return int(cap)
    except Exception:
        pass
    return 64 * 1024 * 1024          # conservative: v7x per-TensorCore VMEM


def _vmem_need(C, OALL, HW_pad, ct, x_bytes, cd_bytes, buffer_const):
    """Estimated VMEM bytes for the pipeline buffers + resident operands."""
    nconst = 1 if buffer_const else 2
    ncx = C // ct
    return (2 * ct * HW_pad * x_bytes                 # x tiles (double-buffered)
            + 2 * ct * HW_pad * x_bytes               # out tiles (double-buffered)
            + nconst * HW_pad * _S2_PAD * cd_bytes    # pooling operator
            + nconst * _S2_PAD * HW_pad * cd_bytes    # upsample operator
            + nconst * ncx * OALL * ct * cd_bytes     # resident stacked conv weight
            + OALL * _S2_PAD * 4)                     # f32 conv accumulator scratch


def _select_ct(C, OALL, HW_pad, x_bytes, cd_bytes, budget, buffer_const):
    """Largest channel tile (prefers 256/512, MXU K-depth) that fits the budget."""
    last = None
    for ct in _CT_CANDIDATES:
        if C % ct or OALL % ct:
            continue
        last = ct
        if _vmem_need(C, OALL, HW_pad, ct, x_bytes, cd_bytes, buffer_const) <= budget:
            return ct
    if last is None:
        raise ValueError("fused PyramidPooling kernel requires in_channels % 8 == 0")
    # TODO(synk): nothing fits the VMEM budget -> would need an HW tile axis;
    #             fall back to the smallest channel tile.
    return last


# ---------------------------------------------------------------------------
# fused Pallas kernel
# ---------------------------------------------------------------------------
def _psp_fused_kernel(x_ref, w_ref, pmat_ref, umat_ref, out_ref, z_acc,
                      *, ncx, ct, out_per_branch, compute_dtype):
    j = pl.program_id(1)

    @pl.when(j == 0)
    def _init():
        z_acc[...] = jnp.zeros_like(z_acc)

    # Phase 1 (j < ncx): identity-copy this x channel tile into the output slab,
    # pool it, and accumulate the fused 1x1 conv (BN scale already folded in).
    @pl.when(j < ncx)
    def _pool_conv_copy():
        x_tile = x_ref[0]                                              # (CT, HW_pad)
        out_ref[0] = x_tile                                            # concat identity part
        pooled = jnp.dot(x_tile.astype(compute_dtype), pmat_ref[...],
                         preferred_element_type=jnp.float32)           # (CT, 128)
        w_tile = w_ref[j]                                              # (4*O, CT), VMEM-resident
        z_acc[...] += jnp.dot(w_tile, pooled.astype(compute_dtype),
                              preferred_element_type=jnp.float32)      # (4*O, 128)

    # Phase 2 (j >= ncx): ReLU + in-kernel block-diagonal branch mask on a row
    # slice of the accumulator, then one lane-dense upsample matmul writing a
    # (CT, HW_pad) feature tile.
    @pl.when(j >= ncx)
    def _relu_upsample():
        r0 = pl.multiple_of((j - ncx) * ct, 8)
        z = z_acc[pl.ds(r0, ct), :]                                    # (CT, 128) f32
        # Branch mask synthesized on the VPU (free filler in a DMA-bound kernel):
        # row r belongs to branch r // O; pooled column c belongs to bin
        # 0:[0,1) 1:[1,5) 2:[5,14) 3:[14,50); columns >= 50 are lane padding.
        row = r0 + lax.broadcasted_iota(jnp.int32, (ct, _S2_PAD), 0)
        col = lax.broadcasted_iota(jnp.int32, (ct, _S2_PAD), 1)
        O = out_per_branch
        branch = ((row >= O).astype(jnp.int32)
                  + (row >= 2 * O).astype(jnp.int32)
                  + (row >= 3 * O).astype(jnp.int32))
        col_bin = ((col >= _S2_OFF[1]).astype(jnp.int32)
                   + (col >= _S2_OFF[2]).astype(jnp.int32)
                   + (col >= _S2_OFF[3]).astype(jnp.int32))
        mask = (branch == col_bin) & (col < _S2_TOTAL)
        y = jnp.where(mask, jnp.maximum(z, 0.0), 0.0)
        feat = jnp.dot(y.astype(compute_dtype), umat_ref[...],
                       preferred_element_type=jnp.float32)             # (CT, HW_pad)
        out_ref[0] = feat.astype(out_ref.dtype)


@functools.partial(jax.jit,
                   static_argnames=("ct", "compute_dtype", "buffer_const", "vmem_limit"))
def pyramid_pooling_forward(x, w_eff, pmat, umat, *, ct, compute_dtype,
                            buffer_const, vmem_limit):
    N, C, H, W = x.shape
    OALL = w_eff.shape[0]                    # 4 * out_channels
    HW = H * W
    HW_pad = pmat.shape[0]
    S2P = pmat.shape[1]

    ncx = C // ct                            # phase-1 steps (pool/conv/copy)
    njf = OALL // ct                         # phase-2 steps (upsample writes)
    grid = (N, ncx + njf)

    x_flat = x.reshape(N, C, HW)
    if HW_pad != HW:
        x_flat = jnp.pad(x_flat, ((0, 0), (0, 0), (0, HW_pad - HW)))

    # Resident, channel-pre-split conv weight (ncx, 4*O, CT): block index never
    # changes, so it is DMA'd ONCE for the whole grid (not once per batch elem).
    w_split = jnp.transpose(w_eff.reshape(OALL, ncx, ct), (1, 0, 2)).astype(compute_dtype)
    pmat_cd = pmat.astype(compute_dtype)
    umat_cd = umat.astype(compute_dtype)

    const_mode = dict(pipeline_mode=pl.Buffered(1)) if buffer_const else {}

    kernel = functools.partial(_psp_fused_kernel, ncx=ncx, ct=ct,
                               out_per_branch=OALL // 4, compute_dtype=compute_dtype)

    out = pl.pallas_call(
        kernel,
        out_shape=jax.ShapeDtypeStruct((N, C + OALL, HW_pad), x.dtype),
        grid_spec=pltpu.PrefetchScalarGridSpec(
            num_scalar_prefetch=0,
            grid=grid,
            in_specs=[
                # x channel tile; index pinned during phase 2 (no extra reads)
                pl.BlockSpec((1, ct, HW_pad),
                             lambda n, j: (n, jnp.minimum(j, ncx - 1), 0)),
                # stacked conv weight, resident for the whole grid
                pl.BlockSpec((ncx, OALL, ct), lambda n, j: (0, 0, 0), **const_mode),
                pl.BlockSpec((HW_pad, S2P), lambda n, j: (0, 0), **const_mode),
                pl.BlockSpec((S2P, HW_pad), lambda n, j: (0, 0), **const_mode),
            ],
            out_specs=pl.BlockSpec((1, ct, HW_pad), lambda n, j: (n, j, 0)),
            scratch_shapes=[pltpu.VMEM((OALL, S2P), jnp.float32)],
        ),
        compiler_params=pltpu.CompilerParams(
            dimension_semantics=("parallel", "arbitrary"),
            vmem_limit_bytes=vmem_limit,
        ),
    )(x_flat, w_split, pmat_cd, umat_cd)

    if HW_pad != HW:
        out = out[:, :, :HW]
    return out.reshape(N, C + OALL, H, W)


# ---------------------------------------------------------------------------
# module wrapper
# ---------------------------------------------------------------------------
class PyramidPoolingPallas:
    BINS = BINS

    def __init__(self, in_channels, key, param_dtype=jnp.float32):
        assert in_channels % 8 == 0, "fused kernel assumes in_channels % 8 == 0"
        self.in_channels = in_channels
        self.out_channels = in_channels // 4
        self.param_dtype = param_dtype

        # kaiming_normal_(a=1) on a 1x1 conv: std = 1/sqrt(fan_in) = 1/sqrt(C)
        std = 1.0 / np.sqrt(in_channels)
        keys = jax.random.split(key, 4)
        self.weights = [
            (std * jax.random.normal(k, (self.out_channels, in_channels))).astype(param_dtype)
            for k in keys
        ]
        # BatchNorm2d, inference mode with default running stats:
        #   gamma=1, beta=0, mean=0, var=1, eps=1e-5 -> scale = 1/sqrt(1+eps), bias = 0
        eps = 1e-5
        self.bn_scale = jnp.full((self.out_channels, 1), 1.0 / np.sqrt(1.0 + eps), param_dtype)
        self.bn_bias = jnp.zeros((self.out_channels, 1), param_dtype)
        # Fold BN scale into the conv weights and stack the four branches (4*O, C).
        # TODO(synk): nonzero BN bias / non-default running stats would need the
        #             bias re-introduced as a kernel operand (added before ReLU).
        self.w_eff = jnp.concatenate([self.bn_scale * w for w in self.weights], axis=0)
        self._op_cache = {}                 # (H, W) -> (Pmat_all, Umat_all)

    def _operators(self, H, W):
        key = (H, W)
        if key not in self._op_cache:
            self._op_cache[key] = _build_fused_operators(H, W)
        return self._op_cache[key]

    def __call__(self, x, compute_dtype=jnp.bfloat16):
        # bf16 operands (f32 accumulation) by default on ALL generations; the
        # MXU is bf16-native even on v5e and the kernel is HBM-bandwidth bound.
        N, C, H, W = x.shape
        assert C == self.in_channels
        pmat, umat = self._operators(H, W)
        HW_pad = pmat.shape[0]
        OALL = self.w_eff.shape[0]

        x_bytes = jnp.dtype(x.dtype).itemsize
        cd_bytes = jnp.dtype(compute_dtype).itemsize
        capacity = _vmem_capacity_bytes()
        budget = int(capacity * 0.70)
        ct = _select_ct(C, OALL, HW_pad, x_bytes, cd_bytes, budget, buffer_const=True)
        # Size the scoped VMEM limit from the (conservative, double-buffered)
        # requirement; never request the whole physical VMEM (v7x = 64 MiB).
        need = _vmem_need(C, OALL, HW_pad, ct, x_bytes, cd_bytes, buffer_const=False)
        vmem_limit = int(min(capacity * 0.85, max(need + (4 << 20), 32 << 20)))

        try:
            return pyramid_pooling_forward(x, self.w_eff, pmat, umat, ct=ct,
                                           compute_dtype=compute_dtype,
                                           buffer_const=True, vmem_limit=vmem_limit)
        except Exception:
            # Fallback if this JAX version rejects pipeline_mode=pl.Buffered(1);
            # identical math, constants just get the default double buffer.
            return pyramid_pooling_forward(x, self.w_eff, pmat, umat, ct=ct,
                                           compute_dtype=compute_dtype,
                                           buffer_const=False, vmem_limit=vmem_limit)

    # plain-JAX per-branch reference (same math, unfused) for the smoke test
    def reference(self, x):
        N, C, H, W = x.shape
        HW = H * W
        x_flat = x.reshape(N, C, HW).astype(jnp.float32)
        feats = [x]
        for b, s in enumerate(self.BINS):
            Ph = _adaptive_pool_matrix(H, s)
            Pw = _adaptive_pool_matrix(W, s)
            Uh = _bilinear_up_matrix(H, s)
            Uw = _bilinear_up_matrix(W, s)
            P = jnp.asarray(np.kron(Ph, Pw).T, jnp.float32)     # (HW, s*s)
            U = jnp.asarray(np.kron(Uh, Uw).T, jnp.float32)     # (s*s, HW)
            pooled = jnp.einsum("ncp,pq->ncq", x_flat, P)
            z = jnp.einsum("oc,ncq->noq", self.weights[b].astype(jnp.float32), pooled)
            z = z * self.bn_scale[None].astype(jnp.float32) + self.bn_bias[None].astype(jnp.float32)
            y = jnp.maximum(z, 0.0)
            f = jnp.einsum("noq,qp->nop", y, U)
            feats.append(f.reshape(N, self.out_channels, H, W).astype(x.dtype))
        return jnp.concatenate(feats, axis=1)


# ---------------------------------------------------------------------------
if __name__ == "__main__":
    key = jax.random.PRNGKey(0)
    k_x, k_w = jax.random.split(key)

    N, C, H, W = 2, 8, 16, 16                     # in_channels=8 -> out_channels=2
    x = jax.random.normal(k_x, (N, C, H, W), dtype=jnp.float32)

    module = PyramidPoolingPallas(C, k_w)

    # f32 operand path: tight check against the unfused JAX reference
    out = jax.block_until_ready(module(x, compute_dtype=jnp.float32))
    assert out.shape == (N, C + 4 * (C // 4), H, W), out.shape
    ref = module.reference(x)
    assert np.allclose(np.asarray(out), np.asarray(ref), rtol=1e-4, atol=1e-4), \
        "Pallas (f32) output mismatch vs JAX reference"

    # bf16 operand path (MXU-native on v5e/v6e/v7x): loose check, f32 accumulation
    out_bf16 = jax.block_until_ready(module(x))           # default compute dtype
    assert np.allclose(np.asarray(out_bf16), np.asarray(ref), rtol=5e-2, atol=3e-2), \
        "Pallas (bf16) output mismatch vs JAX reference"

    print("KERNEL_OK")
</pallas_src>

<mosaic_0001>
module attributes {stable_mosaic.version = 11 : i64} {
  func.func @_psp_fused_kernel(%arg0: i32, %arg1: i32, %arg2: memref<1x8x256xf32, #tpu.memory_space<vmem>>, %arg3: memref<1x8x8xf32, #tpu.memory_space<vmem>>, %arg4: memref<256x128xf32, #tpu.memory_space<vmem>>, %arg5: memref<128x256xf32, #tpu.memory_space<vmem>>, %arg6: memref<1x8x256xf32, #tpu.memory_space<vmem>>, %arg7: memref<8x128xf32, #tpu.memory_space<vmem>>) attributes {dimension_semantics = [#tpu.dimension_semantics<parallel>, #tpu.dimension_semantics<arbitrary>], iteration_bounds = array<i64: 2, 2>, scalar_prefetch = 0 : i64, scratch_operands = 1 : i64, tpu.core_type = #tpu.core_type<tc>, window_params = [{transform_indices = @transform_0, window_bounds = array<i64: 1, 8, 256>}, {pipeline_mode = #tpu.pipeline_mode<synchronous>, transform_indices = @transform_1, window_bounds = array<i64: 1, 8, 8>}, {pipeline_mode = #tpu.pipeline_mode<synchronous>, transform_indices = @transform_2, window_bounds = array<i64: 256, 128>}, {pipeline_mode = #tpu.pipeline_mode<synchronous>, transform_indices = @transform_3, window_bounds = array<i64: 128, 256>}, {transform_indices = @transform_4, window_bounds = array<i64: 1, 8, 256>}]} {
    %c0_i32 = arith.constant 0 : i32
    %0 = arith.cmpi eq, %arg1, %c0_i32 : i32
    %1 = arith.extui %0 : i1 to i32
    %c0_i32_0 = arith.constant 0 : i32
    %2 = arith.cmpi ne, %1, %c0_i32_0 : i32
    scf.if %2 {
      %cst = arith.constant 0.000000e+00 : f32
      %9 = vector.broadcast %cst : f32 to vector<8x128xf32>
      %c0 = arith.constant 0 : index
      %c0_4 = arith.constant 0 : index
      %10 = vector.load %arg7[%c0, %c0_4] : memref<8x128xf32, #tpu.memory_space<vmem>>, vector<8x128xf32>
      tpu.vector_store %arg7[%c0, %c0_4], %9 {strides = array<i32>} : memref<8x128xf32, #tpu.memory_space<vmem>>, vector<8x128xf32>,
    } else {
    }
    %c1_i32 = arith.constant 1 : i32
    %3 = arith.cmpi slt, %arg1, %c1_i32 : i32
    %4 = arith.extui %3 : i1 to i32
    %c0_i32_1 = arith.constant 0 : i32
    %5 = arith.cmpi ne, %4, %c0_i32_1 : i32
    scf.if %5 {
      %c0 = arith.constant 0 : index
      %c0_4 = arith.constant 0 : index
      %c0_5 = arith.constant 0 : index
      %9 = vector.load %arg2[%c0, %c0_4, %c0_5] : memref<1x8x256xf32, #tpu.memory_space<vmem>>, vector<1x8x256xf32>
      %10 = vector.shape_cast %9 : vector<1x8x256xf32> to vector<8x256xf32>
      %c0_6 = arith.constant 0 : index
      %c0_7 = arith.constant 0 : index
      %c0_8 = arith.constant 0 : index
      %11 = vector.load %arg6[%c0_6, %c0_7, %c0_8] : memref<1x8x256xf32, #tpu.memory_space<vmem>>, vector<1x8x256xf32>
      %12 = vector.shape_cast %11 : vector<1x8x256xf32> to vector<8x256xf32>
      %13 = vector.shape_cast %10 : vector<8x256xf32> to vector<1x8x256xf32>
      tpu.vector_store %arg6[%c0_6, %c0_7, %c0_8], %13 {strides = array<i32>} : memref<1x8x256xf32, #tpu.memory_space<vmem>>, vector<1x8x256xf32>,
      %c0_9 = arith.constant 0 : index
      %c0_10 = arith.constant 0 : index
      %14 = vector.load %arg4[%c0_9, %c0_10] : memref<256x128xf32, #tpu.memory_space<vmem>>, vector<256x128xf32>
      %cst = arith.constant dense<0.000000e+00> : vector<8x128xf32>
      %15 = tpu.matmul %10, %14, %cst {dimension_numbers = #tpu.dot_dimension_numbers<[1], [0], [0], [1], [0, 0, 1, 1], [], []>} : vector<8x256xf32>, vector<256x128xf32>, vector<8x128xf32> -> vector<8x128xf32>
      %16 = arith.index_cast %arg1 : i32 to index
      %c0_11 = arith.constant 0 : index
      %c0_12 = arith.constant 0 : index
      %17 = vector.load %arg3[%16, %c0_11, %c0_12] : memref<1x8x8xf32, #tpu.memory_space<vmem>>, vector<1x8x8xf32>
      %18 = vector.shape_cast %17 : vector<1x8x8xf32> to vector<8x8xf32>
      %c0_13 = arith.constant 0 : index
      %c0_14 = arith.constant 0 : index
      %19 = vector.load %arg7[%c0_13, %c0_14] : memref<8x128xf32, #tpu.memory_space<vmem>>, vector<8x128xf32>
      %cst_15 = arith.constant dense<0.000000e+00> : vector<8x128xf32>
      %20 = tpu.matmul %18, %15, %cst_15 {dimension_numbers = #tpu.dot_dimension_numbers<[1], [0], [0], [1], [0, 0, 1, 1], [], []>} : vector<8x8xf32>, vector<8x128xf32>, vector<8x128xf32> -> vector<8x128xf32>
      %21 = arith.addf %19, %20 : vector<8x128xf32>
      %c0_16 = arith.constant 0 : index
      %c0_17 = arith.constant 0 : index
      %22 = vector.load %arg7[%c0_16, %c0_17] : memref<8x128xf32, #tpu.memory_space<vmem>>, vector<8x128xf32>
      tpu.vector_store %arg7[%c0_16, %c0_17], %21 {strides = array<i32>} : memref<8x128xf32, #tpu.memory_space<vmem>>, vector<8x128xf32>,
    } else {
    }
    %c1_i32_2 = arith.constant 1 : i32
    %6 = arith.cmpi sge, %arg1, %c1_i32_2 : i32
    %7 = arith.extui %6 : i1 to i32
    %c0_i32_3 = arith.constant 0 : i32
    %8 = arith.cmpi ne, %7, %c0_i32_3 : i32
    scf.if %8 {
      %c1_i32_4 = arith.constant 1 : i32
      %9 = arith.subi %arg1, %c1_i32_4 : i32
      %c8_i32 = arith.constant 8 : i32
      %10 = arith.muli %9, %c8_i32 : i32
      %11 = tpu.assume_multiple %10, 8 : i32
      %12 = arith.index_cast %11 : i32 to index
      %c0 = arith.constant 0 : index
      %13 = vector.load %arg7[%12, %c0] : memref<8x128xf32, #tpu.memory_space<vmem>>, vector<8x128xf32>
      %14 = tpu.iota {dimensions = array<i32: 0>} : vector<8x128xi32>
      %15 = vector.broadcast %11 : i32 to vector<8x128xi32>
      %16 = arith.addi %15, %14 : vector<8x128xi32>
      %17 = tpu.iota {dimensions = array<i32: 1>} : vector<8x128xi32>
      %c2_i32 = arith.constant 2 : i32
      %18 = vector.broadcast %c2_i32 : i32 to vector<8x128xi32>
      %19 = arith.cmpi sge, %16, %18 : vector<8x128xi32>
      %20 = arith.extui %19 : vector<8x128xi1> to vector<8x128xi32>
      %c4_i32 = arith.constant 4 : i32
      %21 = vector.broadcast %c4_i32 : i32 to vector<8x128xi32>
      %22 = arith.cmpi sge, %16, %21 : vector<8x128xi32>
      %23 = arith.extui %22 : vector<8x128xi1> to vector<8x128xi32>
      %24 = arith.addi %20, %23 : vector<8x128xi32>
      %c6_i32 = arith.constant 6 : i32
      %25 = vector.broadcast %c6_i32 : i32 to vector<8x128xi32>
      %26 = arith.cmpi sge, %16, %25 : vector<8x128xi32>
      %27 = arith.extui %26 : vector<8x128xi1> to vector<8x128xi32>
      %28 = arith.addi %24, %27 : vector<8x128xi32>
      %c1_i32_5 = arith.constant 1 : i32
      %29 = vector.broadcast %c1_i32_5 : i32 to vector<8x128xi32>
      %30 = arith.cmpi sge, %17, %29 : vector<8x128xi32>
      %31 = arith.extui %30 : vector<8x128xi1> to vector<8x128xi32>
      %c5_i32 = arith.constant 5 : i32
      %32 = vector.broadcast %c5_i32 : i32 to vector<8x128xi32>
      %33 = arith.cmpi sge, %17, %32 : vector<8x128xi32>
      %34 = arith.extui %33 : vector<8x128xi1> to vector<8x128xi32>
      %35 = arith.addi %31, %34 : vector<8x128xi32>
      %c14_i32 = arith.constant 14 : i32
      %36 = vector.broadcast %c14_i32 : i32 to vector<8x128xi32>
      %37 = arith.cmpi sge, %17, %36 : vector<8x128xi32>
      %38 = arith.extui %37 : vector<8x128xi1> to vector<8x128xi32>
      %39 = arith.addi %35, %38 : vector<8x128xi32>
      %40 = arith.cmpi eq, %28, %39 : vector<8x128xi32>
      %c50_i32 = arith.constant 50 : i32
      %41 = vector.broadcast %c50_i32 : i32 to vector<8x128xi32>
      %42 = arith.cmpi slt, %17, %41 : vector<8x128xi32>
      %43 = arith.andi %40, %42 : vector<8x128xi1>
      %cst = arith.constant 0.000000e+00 : f32
      %44 = vector.broadcast %cst : f32 to vector<8x128xf32>
      %45 = arith.maximumf %13, %44 : vector<8x128xf32>
      %cst_6 = arith.constant 0.000000e+00 : f32
      %46 = vector.broadcast %cst_6 : f32 to vector<8x128xf32>
      %47 = arith.select %43, %45, %46 : vector<8x128xi1>, vector<8x128xf32>
      %c0_7 = arith.constant 0 : index
      %c0_8 = arith.constant 0 : index
      %48 = vector.load %arg5[%c0_7, %c0_8] : memref<128x256xf32, #tpu.memory_space<vmem>>, vector<128x256xf32>
      %cst_9 = arith.constant dense<0.000000e+00> : vector<8x256xf32>
      %49 = tpu.matmul %47, %48, %cst_9 {dimension_numbers = #tpu.dot_dimension_numbers<[1], [0], [0], [1], [0, 0, 1, 1], [], []>} : vector<8x128xf32>, vector<128x256xf32>, vector<8x256xf32> -> vector<8x256xf32>
      %c0_10 = arith.constant 0 : index
      %c0_11 = arith.constant 0 : index
      %c0_12 = arith.constant 0 : index
      %50 = vector.load %arg6[%c0_10, %c0_11, %c0_12] : memref<1x8x256xf32, #tpu.memory_space<vmem>>, vector<1x8x256xf32>
      %51 = vector.shape_cast %50 : vector<1x8x256xf32> to vector<8x256xf32>
      %52 = vector.shape_cast %49 : vector<8x256xf32> to vector<1x8x256xf32>
      tpu.vector_store %arg6[%c0_10, %c0_11, %c0_12], %52 {strides = array<i32>} : memref<1x8x256xf32, #tpu.memory_space<vmem>>, vector<1x8x256xf32>,
    } else {
    }
    return
  }
  func.func @transform_0(%arg0: i32, %arg1: i32) -> (i32, i32, i32) {
    %c0_i32 = arith.constant 0 : i32
    %0 = arith.minsi %arg1, %c0_i32 : i32
    %c0_i32_0 = arith.constant 0 : i32
    %c0_i32_1 = arith.constant 0 : i32
    return %arg0, %0, %c0_i32_0 : i32, i32, i32
  }
  func.func @transform_1(%arg0: i32, %arg1: i32) -> (i32, i32, i32) {
    %c0_i32 = arith.constant 0 : i32
    %c0_i32_0 = arith.constant 0 : i32
    %c0_i32_1 = arith.constant 0 : i32
    %c0_i32_2 = arith.constant 0 : i32
    return %c0_i32, %c0_i32_0, %c0_i32_1 : i32, i32, i32
  }
  func.func @transform_2(%arg0: i32, %arg1: i32) -> (i32, i32) {
    %c0_i32 = arith.constant 0 : i32
    %c0_i32_0 = arith.constant 0 : i32
    %c0_i32_1 = arith.constant 0 : i32
    return %c0_i32, %c0_i32_0 : i32, i32
  }
  func.func @transform_3(%arg0: i32, %arg1: i32) -> (i32, i32) {
    %c0_i32 = arith.constant 0 : i32
    %c0_i32_0 = arith.constant 0 : i32
    %c0_i32_1 = arith.constant 0 : i32
    return %c0_i32, %c0_i32_0 : i32, i32
  }
  func.func @transform_4(%arg0: i32, %arg1: i32) -> (i32, i32, i32) {
    %c0_i32 = arith.constant 0 : i32
    %c0_i32_0 = arith.constant 0 : i32
    return %arg0, %arg1, %c0_i32 : i32, i32, i32
  }
}

module attributes {stable_mosaic.version = 11 : i64} {
  func.func @_psp_fused_kernel(%arg0: i32, %arg1: i32, %arg2: memref<1x8x256xf32, #tpu.memory_space<vmem>>, %arg3: memref<1x8x8xf32, #tpu.memory_space<vmem>>, %arg4: memref<256x128xf32, #tpu.memory_space<vmem>>, %arg5: memref<128x256xf32, #tpu.memory_space<vmem>>, %arg6: memref<1x8x256xf32, #tpu.memory_space<vmem>>, %arg7: memref<8x128xf32, #tpu.memory_space<vmem>>) attributes {dimension_semantics = [#tpu.dimension_semantics<parallel>, #tpu.dimension_semantics<arbitrary>], iteration_bounds = array<i64: 2, 2>, scalar_prefetch = 0 : i64, scratch_operands = 1 : i64, tpu.core_type = #tpu.core_type<tc>, window_params = [{transform_indices = @transform_0, window_bounds = array<i64: 1, 8, 256>}, {pipeline_mode = #tpu.pipeline_mode<synchronous>, transform_indices = @transform_1, window_bounds = array<i64: 1, 8, 8>}, {pipeline_mode = #tpu.pipeline_mode<synchronous>, transform_indices = @transform_2, window_bounds = array<i64: 256, 128>}, {pipeline_mode = #tpu.pipeline_mode<synchronous>, transform_indices = @transform_3, window_bounds = array<i64: 128, 256>}, {transform_indices = @transform_4, window_bounds = array<i64: 1, 8, 256>}]} {
    %c0_i32 = arith.constant 0 : i32
    %0 = arith.cmpi eq, %arg1, %c0_i32 : i32
    %1 = arith.extui %0 : i1 to i32
    %c0_i32_0 = arith.constant 0 : i32
    %2 = arith.cmpi ne, %1, %c0_i32_0 : i32
    scf.if %2 {
      %cst = arith.constant 0.000000e+00 : f32
      %9 = vector.broadcast %cst : f32 to vector<8x128xf32>
      %c0 = arith.constant 0 : index
      %c0_4 = arith.constant 0 : index
      %10 = vector.load %arg7[%c0, %c0_4] : memref<8x128xf32, #tpu.memory_space<vmem>>, vector<8x128xf32>
      tpu.vector_store %arg7[%c0, %c0_4], %9 {strides = array<i32>} : memref<8x128xf32, #tpu.memory_space<vmem>>, vector<8x128xf32>,
    } else {
    }
    %c1_i32 = arith.constant 1 : i32
    %3 = arith.cmpi slt, %arg1, %c1_i32 : i32
    %4 = arith.extui %3 : i1 to i32
    %c0_i32_1 = arith.constant 0 : i32
    %5 = arith.cmpi ne, %4, %c0_i32_1 : i32
    scf.if %5 {
      %c0 = arith.constant 0 : index
      %c0_4 = arith.constant 0 : index
      %c0_5 = arith.constant 0 : index
      %9 = vector.load %arg2[%c0, %c0_4, %c0_5] : memref<1x8x256xf32, #tpu.memory_space<vmem>>, vector<1x8x256xf32>
      %10 = vector.shape_cast %9 : vector<1x8x256xf32> to vector<8x256xf32>
      %c0_6 = arith.constant 0 : index
      %c0_7 = arith.constant 0 : index
      %c0_8 = arith.constant 0 : index
      %11 = vector.load %arg6[%c0_6, %c0_7, %c0_8] : memref<1x8x256xf32, #tpu.memory_space<vmem>>, vector<1x8x256xf32>
      %12 = vector.shape_cast %11 : vector<1x8x256xf32> to vector<8x256xf32>
      %13 = vector.shape_cast %10 : vector<8x256xf32> to vector<1x8x256xf32>
      tpu.vector_store %arg6[%c0_6, %c0_7, %c0_8], %13 {strides = array<i32>} : memref<1x8x256xf32, #tpu.memory_space<vmem>>, vector<1x8x256xf32>,
      %c0_9 = arith.constant 0 : index
      %c0_10 = arith.constant 0 : index
      %14 = vector.load %arg4[%c0_9, %c0_10] : memref<256x128xf32, #tpu.memory_space<vmem>>, vector<256x128xf32>
      %cst = arith.constant dense<0.000000e+00> : vector<8x128xf32>
      %15 = tpu.matmul %10, %14, %cst {dimension_numbers = #tpu.dot_dimension_numbers<[1], [0], [0], [1], [0, 0, 1, 1], [], []>} : vector<8x256xf32>, vector<256x128xf32>, vector<8x128xf32> -> vector<8x128xf32>
      %16 = arith.index_cast %arg1 : i32 to index
      %c0_11 = arith.constant 0 : index
      %c0_12 = arith.constant 0 : index
      %17 = vector.load %arg3[%16, %c0_11, %c0_12] : memref<1x8x8xf32, #tpu.memory_space<vmem>>, vector<1x8x8xf32>
      %18 = vector.shape_cast %17 : vector<1x8x8xf32> to vector<8x8xf32>
      %c0_13 = arith.constant 0 : index
      %c0_14 = arith.constant 0 : index
      %19 = vector.load %arg7[%c0_13, %c0_14] : memref<8x128xf32, #tpu.memory_space<vmem>>, vector<8x128xf32>
      %cst_15 = arith.constant dense<0.000000e+00> : vector<8x128xf32>
      %20 = tpu.matmul %18, %15, %cst_15 {dimension_numbers = #tpu.dot_dimension_numbers<[1], [0], [0], [1], [0, 0, 1, 1], [], []>} : vector<8x8xf32>, vector<8x128xf32>, vector<8x128xf32> -> vector<8x128xf32>
      %21 = arith.addf %19, %20 : vector<8x128xf32>
      %c0_16 = arith.constant 0 : index
      %c0_17 = arith.constant 0 : index
      %22 = vector.load %arg7[%c0_16, %c0_17] : memref<8x128xf32, #tpu.memory_space<vmem>>, vector<8x128xf32>
      tpu.vector_store %arg7[%c0_16, %c0_17], %21 {strides = array<i32>} : memref<8x128xf32, #tpu.memory_space<vmem>>, vector<8x128xf32>,
    } else {
    }
    %c1_i32_2 = arith.constant 1 : i32
    %6 = arith.cmpi sge, %arg1, %c1_i32_2 : i32
    %7 = arith.extui %6 : i1 to i32
    %c0_i32_3 = arith.constant 0 : i32
    %8 = arith.cmpi ne, %7, %c0_i32_3 : i32
    scf.if %8 {
      %c1_i32_4 = arith.constant 1 : i32
      %9 = arith.subi %arg1, %c1_i32_4 : i32
      %c8_i32 = arith.constant 8 : i32
      %10 = arith.muli %9, %c8_i32 : i32
      %11 = tpu.assume_multiple %10, 8 : i32
      %12 = arith.index_cast %11 : i32 to index
      %c0 = arith.constant 0 : index
      %13 = vector.load %arg7[%12, %c0] : memref<8x128xf32, #tpu.memory_space<vmem>>, vector<8x128xf32>
      %14 = tpu.iota {dimensions = array<i32: 0>} : vector<8x128xi32>
      %15 = vector.broadcast %11 : i32 to vector<8x128xi32>
      %16 = arith.addi %15, %14 : vector<8x128xi32>
      %17 = tpu.iota {dimensions = array<i32: 1>} : vector<8x128xi32>
      %c2_i32 = arith.constant 2 : i32
      %18 = vector.broadcast %c2_i32 : i32 to vector<8x128xi32>
      %19 = arith.cmpi sge, %16, %18 : vector<8x128xi32>
      %20 = arith.extui %19 : vector<8x128xi1> to vector<8x128xi32>
      %c4_i32 = arith.constant 4 : i32
      %21 = vector.broadcast %c4_i32 : i32 to vector<8x128xi32>
      %22 = arith.cmpi sge, %16, %21 : vector<8x128xi32>
      %23 = arith.extui %22 : vector<8x128xi1> to vector<8x128xi32>
      %24 = arith.addi %20, %23 : vector<8x128xi32>
      %c6_i32 = arith.constant 6 : i32
      %25 = vector.broadcast %c6_i32 : i32 to vector<8x128xi32>
      %26 = arith.cmpi sge, %16, %25 : vector<8x128xi32>
      %27 = arith.extui %26 : vector<8x128xi1> to vector<8x128xi32>
      %28 = arith.addi %24, %27 : vector<8x128xi32>
      %c1_i32_5 = arith.constant 1 : i32
      %29 = vector.broadcast %c1_i32_5 : i32 to vector<8x128xi32>
      %30 = arith.cmpi sge, %17, %29 : vector<8x128xi32>
      %31 = arith.extui %30 : vector<8x128xi1> to vector<8x128xi32>
      %c5_i32 = arith.constant 5 : i32
      %32 = vector.broadcast %c5_i32 : i32 to vector<8x128xi32>
      %33 = arith.cmpi sge, %17, %32 : vector<8x128xi32>
      %34 = arith.extui %33 : vector<8x128xi1> to vector<8x128xi32>
      %35 = arith.addi %31, %34 : vector<8x128xi32>
      %c14_i32 = arith.constant 14 : i32
      %36 = vector.broadcast %c14_i32 : i32 to vector<8x128xi32>
      %37 = arith.cmpi sge, %17, %36 : vector<8x128xi32>
      %38 = arith.extui %37 : vector<8x128xi1> to vector<8x128xi32>
      %39 = arith.addi %35, %38 : vector<8x128xi32>
      %40 = arith.cmpi eq, %28, %39 : vector<8x128xi32>
      %c50_i32 = arith.constant 50 : i32
      %41 = vector.broadcast %c50_i32 : i32 to vector<8x128xi32>
      %42 = arith.cmpi slt, %17, %41 : vector<8x128xi32>
      %43 = arith.andi %40, %42 : vector<8x128xi1>
      %cst = arith.constant 0.000000e+00 : f32
      %44 = vector.broadcast %cst : f32 to vector<8x128xf32>
      %45 = arith.maximumf %13, %44 : vector<8x128xf32>
      %cst_6 = arith.constant 0.000000e+00 : f32
      %46 = vector.broadcast %cst_6 : f32 to vector<8x128xf32>
      %47 = arith.select %43, %45, %46 : vector<8x128xi1>, vector<8x128xf32>
      %c0_7 = arith.constant 0 : index
      %c0_8 = arith.constant 0 : index
      %48 = vector.load %arg5[%c0_7, %c0_8] : memref<128x256xf32, #tpu.memory_space<vmem>>, vector<128x256xf32>
      %cst_9 = arith.constant dense<0.000000e+00> : vector<8x256xf32>
      %49 = tpu.matmul %47, %48, %cst_9 {dimension_numbers = #tpu.dot_dimension_numbers<[1], [0], [0], [1], [0, 0, 1, 1], [], []>} : vector<8x128xf32>, vector<128x256xf32>, vector<8x256xf32> -> vector<8x256xf32>
      %c0_10 = arith.constant 0 : index
      %c0_11 = arith.constant 0 : index
      %c0_12 = arith.constant 0 : index
      %50 = vector.load %arg6[%c0_10, %c0_11, %c0_12] : memref<1x8x256xf32, #tpu.memory_space<vmem>>, vector<1x8x256xf32>
      %51 = vector.shape_cast %50 : vector<1x8x256xf32> to vector<8x256xf32>
      %52 = vector.shape_cast %49 : vector<8x256xf32> to vector<1x8x256xf32>
      tpu.vector_store %arg6[%c0_10, %c0_11, %c0_12], %52 {strides = array<i32>} : memref<1x8x256xf32, #tpu.memory_space<vmem>>, vector<1x8x256xf32>,
    } else {
    }
    return
  }
  func.func @transform_0(%arg0: i32, %arg1: i32) -> (i32, i32, i32) {
    %c0_i32 = arith.constant 0 : i32
    %0 = arith.minsi %arg1, %c0_i32 : i32
    %c0_i32_0 = arith.constant 0 : i32
    %c0_i32_1 = arith.constant 0 : i32
    return %arg0, %0, %c0_i32_0 : i32, i32, i32
  }
  func.func @transform_1(%arg0: i32, %arg1: i32) -> (i32, i32, i32) {
    %c0_i32 = arith.constant 0 : i32
    %c0_i32_0 = arith.constant 0 : i32
    %c0_i32_1 = arith.constant 0 : i32
    %c0_i32_2 = arith.constant 0 : i32
    return %c0_i32, %c0_i32_0, %c0_i32_1 : i32, i32, i32
  }
  func.func @transform_2(%arg0: i32, %arg1: i32) -> (i32, i32) {
    %c0_i32 = arith.constant 0 : i32
    %c0_i32_0 = arith.constant 0 : i32
    %c0_i32_1 = arith.constant 0 : i32
    return %c0_i32, %c0_i32_0 : i32, i32
  }
  func.func @transform_3(%arg0: i32, %arg1: i32) -> (i32, i32) {
    %c0_i32 = arith.constant 0 : i32
    %c0_i32_0 = arith.constant 0 : i32
    %c0_i32_1 = arith.constant 0 : i32
    return %c0_i32, %c0_i32_0 : i32, i32
  }
  func.func @transform_4(%arg0: i32, %arg1: i32) -> (i32, i32, i32) {
    %c0_i32 = arith.constant 0 : i32
    %c0_i32_0 = arith.constant 0 : i32
    return %arg0, %arg1, %c0_i32 : i32, i32, i32
  }
}

</mosaic_0001>

<bundles_post_ra>
// kernel: pyramid_pooling_forward.1
= control target key start
LH: loop header
LB: loop body
LE: loop exit
PB: predicated region body
PF: predicated region fallthrough
CT: control target
= control target key end

     0   :  { %9 = vsyncpa [#allocation4], 0  ;;  %s1005_s15 = smov 0   ;;  %s1007_s16 = smov 0   ;;  %s1226_s0 = inlined_call_operand.vmem [shape: f32[2,8,256], index: 0, kind: input, shape index: {}]   ;;  %s1227_s1 = inlined_call_operand.vmem [shape: f32[1,8,8], index: 1, kind: input, shape index: {}]   ;;  %s1228_s2 = inlined_call_operand.vmem [shape: f32[256,128], index: 2, kind: input, shape index: {}]   ;;  %s1229_s3 = inlined_call_operand.hbm [shape: f32[128,256], index: 3, kind: input, shape index: {}]   ;;  %s1230_s4 = inlined_call_operand.vmem [shape: f32[2,16,256], index: 4, kind: output, shape index: {}]  }
   0x1   :  { %s1009_s17 = smov 0   ;;  %s1011_s18 = smov 0  }
   0x2   :  { %s1013_s19 = smov 0  }
   0x3 LB: > { %s710_s20 = sadd.s32 4294967295, %s970_s19   ;;  %s24_s21 = sadd.s32 1, %s962_s17  ;;  %s970_s19 = sphi %s1013_s19, %s15_s19   ;;  %s966_s18 = sphi %s1011_s18, %s1242_s18   ;;  %s962_s17 = sphi %s1009_s17, %s1241_s17   ;;  %s958_s16 = sphi %s1007_s16, %s1240_s16   ;;  %s954_s15 = sphi %s1005_s15, %s1239_s15  }
   0x4   : > { %p25_p0 = scmp.ge.s32.totalorder %s24_s21, 2  ;;  %s27_s22 = sadd.s32 1, %s966_s18 }
   0x5   : > { %p712_p1 = scmp.ge.s32.totalorder %s970_s19, 1  ;;  %p155_p2 = scmp.lt.s32.totalorder %s970_s19, 5 }
   0x6   : > { %s1244_s21 = smov (%p25_p0, %s24_s21), 0  ;;  %s1246_s22 = smov (!%p25_p0, %s27_s22), %s966_s18 }
   0x7   : > { %p1038_p3 = pnand %p712_p1, %p155_p2  ;;  %p29_p4 = scmp.ge.s32.totalorder %s1246_s22, 2 }
   0x8   : > { %p1042_p5 = scmp.eq.s32.totalorder %s710_s20, 0  ;;  %s972_s25 = smov [#allocation3]  }
   0x9   : > { %s1234_s23 = scalar_select %p1038_p3, 1, 0 }
   0xa   : > { %s1235_s24 = scalar_select %p1042_p5, 1, 0 }
   0xb   : > { %p846_p6 = pneg %p1038_p3  ;;  %s1248_s22 = smov (%p29_p4, %s1246_s22), 0 }
   0xc   : > { %s173_s26 = sshll.u32 %s972_s25, 4  ;;  %s900_s30 = scalar_lea.hbm %s1229_s3, 4096  ;;  %s174_s26 = int_to_ptr.vmem [resolvable:$true] %s173_s26 }
   0xd   : > { %p1052_p7 = pnand %p1042_p5, %p846_p6  ;;  %p901_p8 = scmp.ne.s32.totalorder %s1229_s3, %s900_s30 }
   0xe   : > { %p907_p12 = scmp.lt.u32.totalorder %s900_s30, %s1229_s3 }
   0xf   : > { %p902_p9 = pneg %p1052_p7 }
  0x11   : > { %p903_p10 = pnand %p902_p9, %p901_p8 }
  0x13   : > { %p904_p11 = pneg %p903_p10 }
  0x15   : > { %p909_p13 = pnand %p907_p12, %p904_p11 }
  0x17   : > { %912 = shalt.err (!%p909_p13)
}
  0x18   : > { %s913_s9 = scalar_lea.vmem %s174_s26, 4096  ;;  %p921_p4 = scmp.lt.s32.totalorder %s174_s26, %s174_s26 }
  0x19   : > { %p914_p0 = scmp.ne.s32.totalorder %s174_s26, %s913_s9  ;;  %p922_p6 = scmp.lt.s32.totalorder %s913_s9, %s913_s9 }
  0x1b   : > { %p916_p1 = pnand %p914_p0, %p902_p9  ;;  %p923_p5 = por %p922_p6, %p921_p4 }
  0x1d   : > { %p917_p2 = pneg %p916_p1 }
  0x1f   : > { %p924_p3 = pnand %p923_p5, %p917_p2 }
  0x21   : > { %927 = shalt.err (!%p924_p3)
}
  0x22   : > { %s973_s10 = smov 256   ;;  %s974_s11 = smov 16  }
  0x23   : > { %849 = dma.hbm_to_vmem [thread:$0]  (!%p1052_p7), %s1229_s3, 4096, %s174_s26, [#allocation4], %s973_s10, %s973_s10, %s974_s11  }
  0x24   : > { %p1237_p8 = scmp.ne.s32.totalorder %s1234_s23, 0 }
  0x25   : > { %p1238_p10 = scmp.ne.s32.totalorder (!%p1237_p8), %s1235_s24, 0 }
  0x26   : > { %205 = sbr.rel (%p1237_p8) target bundleno = 777 (0x309), region = 36 }
  0x2d   : > { %949 = dma.done.wait (%p1238_p10), [#allocation4], 4096  }
  0x2e   : > { %951 = vsyncadd (%p1238_p10), [#allocation4], 4294963200  ;;  %p241_p3 = scmp.lt.s32.totalorder %s954_s15, 0  ;;  %p243_p5 = scmp.lt.s32.totalorder %s958_s16, 1 }
  0x2f   : > { %p256_p7 = scmp.lt.s32.totalorder %s954_s15, 1  ;;  %p726_p9 = scmp.ne.s32.totalorder %s954_s15, 0 }
  0x30   : > { %s242_s14 = scalar_select %p241_p3, %s954_s15, 0 }
  0x31   : > { %s1250_s16 = smov (!%p243_p5, %s958_s16), 1  ;;  %v975_v0 = vmov (!%p726_p9), 0.0  }
  0x32   : > { %s1252_s14 = smov (!%p241_p3, %s242_s14), 0  ;;  %s721_s20 = sshll.u32 %s1250_s16, 1  ;;  %267 = vst [vmem:[#allocation2] sm:$0xff] (!%p726_p9), %v975_v0 }
  0x33   : > { %s720_s23 = sshll.u32 %s1252_s14, 1  ;;  %s724_s29 = sshll.u32 %s1250_s16, 2 }
  0x34   : > { %s249_s25 = sadd.s32 %s721_s20, %s720_s23 }
  0x35   : > { %s722_s26 = sshll.u32 %s249_s25, 3 }
  0x36   : > { %s1086_s28 = scalar_lea.vmem %s1226_s0, %s722_s26  ;;  %266 = sbr.rel (%p726_p9) target bundleno = 61 (0x3d), region = 44 }
  0x37   : > { %s257_s30 = scalar_select %p256_p7, %s954_s15, 1 }
  0x39   : > { %s723_s5 = sshll.u32 %s257_s30, 1 }
  0x3a   : > { %s260_s6 = sadd.s32 %s724_s29, %s723_s5 }
  0x3b   : > { %s725_s7 = sshll.u32 %s260_s6, 3 }
  0x3c   : > { %s1094_s10 = scalar_lea.vmem %s1230_s4, %s725_s7 }
  0x3d PF: > { %p727_p11 = scmp.ge.s32.totalorder %s954_s15, 1 }
  0x3e   : > { %v292_v1 = vld [vmem:[%s1228_s2 + $0x80] sm:$0xff] (!%p727_p11)  ;;  %v293_v2 = vld [vmem:[%s1228_s2 + $0x88] sm:$0xff] (!%p727_p11)  ;;  %v294_v6 = vld [vmem:[%s1228_s2 + $0x90] sm:$0xff] (!%p727_p11)  ;;  %v976_v51 = vmov (!%p727_p11), 0.0   ;;  %vm977_vm0 = vmmov (!%p727_p11), 0   ;;  %s728_s26 = sshll.u32 (!%p727_p11), %s954_s15, 3 }
  0x3f   : > { %271 = sbr.rel (%p727_p11) target bundleno = 528 (0x210), region = 48  ;;  %v276_v3 = vld [vmem:[%s1228_s2] sm:$0xff] (!%p727_p11)  ;;  %v778_v4 = vpack.c.bf16 (!%p727_p11), %v293_v2, %v292_v1  ;;  %v277_v5 = vld [vmem:[%s1228_s2 + $0x8] sm:$0xff] (!%p727_p11)  ;;  %v295_v7 = vld [vmem:[%s1228_s2 + $0x98] sm:$0xff] (!%p727_p11)  ;;  %773 = vmatprep.subr.mxu1 (!%p727_p11), %v976_v51  ;;  %775 = vmatprep.mubr.msk.f32.mxu1 (!%p727_p11), %vm977_vm0, %v976_v51  ;;  %s379_s29 = scalar_lea.vmem (!%p727_p11), %s1227_s1, %s728_s26  ;;  %vm382_vm1 = vcmask (!%p727_p11), 64512  }
  0x40   : > { %v780_v8 = vpack.c.bf16 (!%p727_p11), %v277_v5, %v276_v3  ;;  %v782_v9 = vpack.c.bf16 (!%p727_p11), %v295_v7, %v294_v6  ;;  %v278_v10 = vld [vmem:[%s1228_s2 + $0x10] sm:$0xff] (!%p727_p11)  ;;  %v279_v11 = vld [vmem:[%s1228_s2 + $0x18] sm:$0xff] (!%p727_p11)  ;;  %v296_v12 = vld [vmem:[%s1228_s2 + $0xa0] sm:$0xff] (!%p727_p11) }
  0x41   : > { %779 = vmatprep.subr.bf16.mxu0 (!%p727_p11), %v778_v4  ;;  %v297_v13 = vld [vmem:[%s1228_s2 + $0xa8] sm:$0xff] (!%p727_p11)  ;;  %v784_v14 = vpack.c.bf16 (!%p727_p11), %v279_v11, %v278_v10  ;;  %v280_v16 = vld [vmem:[%s1228_s2 + $0x20] sm:$0xff] (!%p727_p11)  ;;  %v298_v18 = vld [vmem:[%s1228_s2 + $0xb0] sm:$0xff] (!%p727_p11) }
  0x42   : > { %781 = vmatpush3.bf16.msra.mxu0 (!%p727_p11), %v780_v8  ;;  %v786_v15 = vpack.c.bf16 (!%p727_p11), %v297_v13, %v296_v12  ;;  %v281_v17 = vld [vmem:[%s1228_s2 + $0x28] sm:$0xff] (!%p727_p11)  ;;  %v299_v19 = vld [vmem:[%s1228_s2 + $0xb8] sm:$0xff] (!%p727_p11)  ;;  %v282_v22 = vld [vmem:[%s1228_s2 + $0x30] sm:$0xff] (!%p727_p11) }
  0x43   : > { %783 = vmatprep.subr.bf16.mxu0 (!%p727_p11), %v782_v9  ;;  %v788_v20 = vpack.c.bf16 (!%p727_p11), %v281_v17, %v280_v16  ;;  %v790_v21 = vpack.c.bf16 (!%p727_p11), %v299_v19, %v298_v18  ;;  %v283_v23 = vld [vmem:[%s1228_s2 + $0x38] sm:$0xff] (!%p727_p11)  ;;  %v300_v24 = vld [vmem:[%s1228_s2 + $0xc0] sm:$0xff] (!%p727_p11)  ;;  %v301_v25 = vld [vmem:[%s1228_s2 + $0xc8] sm:$0xff] (!%p727_p11) }
  0x44   : > { %v273_v26 = vld [vmem:[%s1086_s28 + $0x8] sm:$0xff] (!%p727_p11)  ;;  %v272_v27 = vld [vmem:[%s1086_s28] sm:$0xff] (!%p727_p11)  ;;  %v792_v28 = vpack.c.bf16 (!%p727_p11), %v283_v23, %v282_v22  ;;  %v794_v29 = vpack.c.bf16 (!%p727_p11), %v301_v25, %v300_v24  ;;  %v302_v32 = vld [vmem:[%s1228_s2 + $0xd0] sm:$0xff] (!%p727_p11) }
  0x45   : > { %275 = vst [vmem:[%s1094_s10 + $0x8] sm:$0xff] (!%p727_p11), %v273_v26  ;;  %372 = vmatprep.mubr.f32.mxu0 (!%p727_p11), %v273_v26  ;;  %274 = vst [vmem:[%s1094_s10] sm:$0xff] (!%p727_p11), %v272_v27  ;;  %v284_v30 = vld [vmem:[%s1228_s2 + $0x40] sm:$0xff] (!%p727_p11)  ;;  %v285_v31 = vld [vmem:[%s1228_s2 + $0x48] sm:$0xff] (!%p727_p11) }
  0x46   : > { %785 = vmatpush3.bf16.msra.mxu0 %v784_v14  ;;  %v303_v33 = vld [vmem:[%s1228_s2 + $0xd8] sm:$0xff]  ;;  %v796_v34 = vpack.c.bf16 %v285_v31, %v284_v30  ;;  %v286_v36 = vld [vmem:[%s1228_s2 + $0x50] sm:$0xff]  ;;  %v304_v38 = vld [vmem:[%s1228_s2 + $0xe0] sm:$0xff] }
  0x47   : > { %787 = vmatprep.subr.bf16.mxu0 %v786_v15  ;;  %v798_v35 = vpack.c.bf16 %v303_v33, %v302_v32  ;;  %v287_v37 = vld [vmem:[%s1228_s2 + $0x58] sm:$0xff]  ;;  %v305_v39 = vld [vmem:[%s1228_s2 + $0xe8] sm:$0xff]  ;;  %v288_v42 = vld [vmem:[%s1228_s2 + $0x60] sm:$0xff] }
  0x48   : > { %v800_v40 = vpack.c.bf16 %v287_v37, %v286_v36  ;;  %v802_v41 = vpack.c.bf16 %v305_v39, %v304_v38  ;;  %v289_v43 = vld [vmem:[%s1228_s2 + $0x68] sm:$0xff]  ;;  %v306_v44 = vld [vmem:[%s1228_s2 + $0xf0] sm:$0xff]  ;;  %v307_v45 = vld [vmem:[%s1228_s2 + $0xf8] sm:$0xff] }
  0x49   : > { %v804_v46 = vpack.c.bf16 %v289_v43, %v288_v42  ;;  %v806_v47 = vpack.c.bf16 %v307_v45, %v306_v44  ;;  %v290_v48 = vld [vmem:[%s1228_s2 + $0x70] sm:$0xff]  ;;  %v291_v49 = vld [vmem:[%s1228_s2 + $0x78] sm:$0xff]  ;;  %v380_v55 = vld [vmem:[%s379_s29] sm:$0xff] }
  0x4a   : > { %789 = vmatpush3.bf16.msra.mxu0 %v788_v20  ;;  %v808_v50 = vpack.c.bf16 %v291_v49, %v290_v48  ;;  %v381_v56 = vld [vmem:[#allocation2] sm:$0xff] }
  0x4b   : > { %791 = vmatprep.subr.bf16.mxu0 %v790_v21 }
  0x4e   : > { %793 = vmatpush3.bf16.msra.mxu0 %v792_v28 }
  0x4f   : > { %795 = vmatprep.subr.bf16.mxu0 %v794_v29 }
  0x52   : > { %797 = vmatpush3.bf16.msra.mxu0 %v796_v34 }
  0x53   : > { %799 = vmatprep.subr.bf16.mxu0 %v798_v35 }
  0x56   : > { %801 = vmatpush3.bf16.msra.mxu0 %v800_v40 }
  0x57   : > { %803 = vmatprep.subr.bf16.mxu0 %v802_v41 }
  0x5a   : > { %805 = vmatpush3.bf16.msra.mxu0 %v804_v46 }
  0x5b   : > { %807 = vmatprep.subr.bf16.mxu0 %v806_v47 }
  0x5e   : > { %809 = vmatpush3.bf16.msra.mxu0 %v808_v50 }
  0x61   : > { %373 = vmatmul.mubr.f32.vlgmr.msra.gmra.mrb[0].mxu0 %v272_v27 }
 0x134   : > { %v768_v52 = vpop.f32.mrb[0].mxu0 }
 0x135   : > { %v769_v53 = vpop.f32.mrb[1].mxu0 }
 0x136   : > { %v770_v54 = vadd.f32 %v769_v53, %v768_v52 }
 0x138   : > { %774 = vmatpush3.msra.mxu1 %v770_v54 }
 0x139   : > { %776 = vmatmul.mubr.msk.f32.vlgmr.msra.gmra.mrb[0].mxu1 %vm382_vm1, %v380_v55 }
 0x20c   : > { %v452_v57 = vpop.f32.mrb[0].mxu1 }
 0x20d   : > { %v456_v58 = vadd.f32 %v452_v57, %v381_v56  ;;  %v777_v59 = vpop.f32.mrb[1].mxu1 }
 0x20f   : > { %457 = vst [vmem:[#allocation2] sm:$0xff] %v456_v58 }
 0x210 PF: > { %461 = sbr.rel (%p256_p7) target bundleno = 777 (0x309), region = 52  ;;  %v494_v60 = vld [vmem:[#allocation3 + $0x8] sm:$0xff] (!%p256_p7)  ;;  %v496_v61 = vld [vmem:[#allocation3 + $0x18] sm:$0xff] (!%p256_p7)  ;;  %v493_v62 = vld [vmem:[#allocation3] sm:$0xff] (!%p256_p7)  ;;  %v978_v3 = vmov (!%p256_p7), 0.0   ;;  %s731_s30 = sadd.s32 (!%p256_p7), 4294967295, %s954_s15  ;;  %v466_v10 = vlaneseq (!%p256_p7) }
 0x211   : > { %v810_v63 = vpack.c.bf16 (!%p256_p7), %v496_v61, %v494_v60  ;;  %v495_v0 = vld [vmem:[#allocation3 + $0x10] sm:$0xff] (!%p256_p7)  ;;  %v498_v1 = vld [vmem:[#allocation3 + $0x28] sm:$0xff] (!%p256_p7)  ;;  %v500_v2 = vld [vmem:[#allocation3 + $0x38] sm:$0xff] (!%p256_p7)  ;;  %589 = vmatprep.mubr.f32.mxu0 (!%p256_p7), %v978_v3  ;;  %s1205_s5 = sshll.u32 (!%p256_p7), %s731_s30, 3  ;;  %v979_v39 = vmov (!%p256_p7), 0  }
 0x212   : > { %v812_v4 = vpack.c.bf16 (!%p256_p7), %v495_v0, %v493_v62  ;;  %v814_v5 = vpack.c.bf16 (!%p256_p7), %v500_v2, %v498_v1  ;;  %v497_v6 = vld [vmem:[#allocation3 + $0x20] sm:$0xff] (!%p256_p7)  ;;  %v499_v7 = vld [vmem:[#allocation3 + $0x30] sm:$0xff] (!%p256_p7)  ;;  %v502_v8 = vld [vmem:[#allocation3 + $0x48] sm:$0xff] (!%p256_p7)  ;;  %v467_v17 = vshrl.u32 (!%p256_p7), %v466_v10, 7  ;;  %v468_v19 = vstv (!%p256_p7), %s1205_s5  ;;  %s464_s15 = scalar_lea.vmem (!%p256_p7), [#allocation2], %s1205_s5 }
 0x213   : > { %811 = vmatprep.subr.bf16.mxu0 (!%p256_p7), %v810_v63  ;;  %v504_v9 = vld [vmem:[#allocation3 + $0x58] sm:$0xff] (!%p256_p7)  ;;  %v816_v11 = vpack.c.bf16 (!%p256_p7), %v499_v7, %v497_v6  ;;  %v501_v13 = vld [vmem:[#allocation3 + $0x40] sm:$0xff] (!%p256_p7)  ;;  %v503_v14 = vld [vmem:[#allocation3 + $0x50] sm:$0xff] (!%p256_p7)  ;;  %v471_v26 = vand.u32 (!%p256_p7), 127, %v466_v10 }
 0x214   : > { %813 = vmatpush1.bf16.msra.mxu0 (!%p256_p7), %v812_v4  ;;  %v818_v12 = vpack.c.bf16 (!%p256_p7), %v504_v9, %v502_v8  ;;  %v506_v15 = vld [vmem:[#allocation3 + $0x68] sm:$0xff] (!%p256_p7)  ;;  %v508_v16 = vld [vmem:[#allocation3 + $0x78] sm:$0xff] (!%p256_p7)  ;;  %v820_v18 = vpack.c.bf16 (!%p256_p7), %v503_v14, %v501_v13  ;;  %v505_v21 = vld [vmem:[#allocation3 + $0x60] sm:$0xff] (!%p256_p7)  ;;  %v469_v25 = vadd.s32 (!%p256_p7), %v468_v19, %v467_v17 }
 0x215   : > { %815 = vmatprep.subr.bf16.mxu0 (!%p256_p7), %v814_v5  ;;  %v822_v20 = vpack.c.bf16 (!%p256_p7), %v508_v16, %v506_v15  ;;  %v507_v22 = vld [vmem:[#allocation3 + $0x70] sm:$0xff] (!%p256_p7)  ;;  %v510_v23 = vld [vmem:[#allocation3 + $0x88] sm:$0xff] (!%p256_p7)  ;;  %v512_v24 = vld [vmem:[#allocation3 + $0x98] sm:$0xff] (!%p256_p7)  ;;  %vm480_vm4 = vcmp.ge.s32.totalorder (!%p256_p7), %v471_v26, 1  ;;  %vm482_vm5 = vcmp.ge.s32.totalorder (!%p256_p7), %v471_v26, 5  ;;  %vm485_vm7 = vcmp.ge.s32.totalorder (!%p256_p7), %v471_v26, 14 }
 0x216   : > { %v824_v27 = vpack.c.bf16 (!%p256_p7), %v507_v22, %v505_v21  ;;  %v826_v28 = vpack.c.bf16 (!%p256_p7), %v512_v24, %v510_v23  ;;  %v509_v29 = vld [vmem:[#allocation3 + $0x80] sm:$0xff] (!%p256_p7)  ;;  %v511_v30 = vld [vmem:[#allocation3 + $0x90] sm:$0xff] (!%p256_p7)  ;;  %v514_v31 = vld [vmem:[#allocation3 + $0xa8] sm:$0xff] (!%p256_p7)  ;;  %vm472_vm2 = vcmp.ge.s32.totalorder (!%p256_p7), %v469_v25, 2  ;;  %vm474_vm3 = vcmp.ge.s32.totalorder (!%p256_p7), %v469_v25, 4 }
 0x217   : > { %v516_v32 = vld [vmem:[#allocation3 + $0xb8] sm:$0xff]  ;;  %v828_v33 = vpack.c.bf16 %v511_v30, %v509_v29  ;;  %v513_v35 = vld [vmem:[#allocation3 + $0xa0] sm:$0xff]  ;;  %v515_v36 = vld [vmem:[#allocation3 + $0xb0] sm:$0xff]  ;;  %v473_v40 = vsel %vm472_vm2, 1, %v979_v39  ;;  %v475_v41 = vsel %vm474_vm3, 1, %v979_v39  ;;  %v481_v42 = vsel %vm480_vm4, 1, %v979_v39 }
 0x218   : > { %817 = vmatpush1.bf16.msra.mxu0 %v816_v11  ;;  %v830_v34 = vpack.c.bf16 %v516_v32, %v514_v31  ;;  %v518_v37 = vld [vmem:[#allocation3 + $0xc8] sm:$0xff]  ;;  %v520_v38 = vld [vmem:[#allocation3 + $0xd8] sm:$0xff]  ;;  %v483_v43 = vsel %vm482_vm5, 1, %v979_v39  ;;  %vm477_vm6 = vcmp.ge.s32.totalorder %v469_v25, 6  ;;  %v832_v44 = vpack.c.bf16 %v515_v36, %v513_v35  ;;  %v517_v46 = vld [vmem:[#allocation3 + $0xc0] sm:$0xff] }
 0x219   : > { %819 = vmatprep.subr.bf16.mxu0 %v818_v12  ;;  %v834_v45 = vpack.c.bf16 %v520_v38, %v518_v37  ;;  %v519_v47 = vld [vmem:[#allocation3 + $0xd0] sm:$0xff]  ;;  %v476_v48 = vadd.s32 %v475_v41, %v473_v40  ;;  %v484_v49 = vadd.s32 %v483_v43, %v481_v42  ;;  %v522_v50 = vld [vmem:[#allocation3 + $0xe8] sm:$0xff]  ;;  %v524_v51 = vld [vmem:[#allocation3 + $0xf8] sm:$0xff]  ;;  %v478_v52 = vsel %vm477_vm6, 1, %v979_v39 }
 0x21a   : > { %v486_v53 = vsel %vm485_vm7, 1, %v979_v39  ;;  %v836_v54 = vpack.c.bf16 %v519_v47, %v517_v46  ;;  %v838_v55 = vpack.c.bf16 %v524_v51, %v522_v50  ;;  %v521_v56 = vld [vmem:[#allocation3 + $0xe0] sm:$0xff]  ;;  %v523_v57 = vld [vmem:[#allocation3 + $0xf0] sm:$0xff]  ;;  %v465_v61 = vld [vmem:[%s464_s15] sm:$0xff]  ;;  %vm489_vm9 = vcmp.lt.s32.totalorder %v471_v26, 50 }
 0x21b   : > { %v479_v58 = vadd.s32 %v478_v52, %v476_v48  ;;  %v487_v59 = vadd.s32 %v486_v53, %v484_v49  ;;  %v840_v60 = vpack.c.bf16 %v523_v57, %v521_v56  ;;  %v491_v62 = vmax.f32 %v465_v61, 0.0 }
 0x21c   : > { %821 = vmatpush1.bf16.msra.mxu0 %v820_v18 }
 0x21d   : > { %823 = vmatprep.subr.bf16.mxu0 %v822_v20  ;;  %vm488_vm8 = vcmp.eq.s32.totalorder %v479_v58, %v487_v59 }
 0x21e   : > { %vm490_vm10 = vmand %vm488_vm8, %vm489_vm9 }
 0x220   : > { %825 = vmatpush1.bf16.msra.mxu0 %v824_v27 }
 0x221   : > { %827 = vmatprep.subr.bf16.mxu0 %v826_v28 }
 0x224   : > { %829 = vmatpush1.bf16.msra.mxu0 %v828_v33 }
 0x225   : > { %831 = vmatprep.subr.bf16.mxu0 %v830_v34 }
 0x228   : > { %833 = vmatpush1.bf16.msra.mxu0 %v832_v44 }
 0x229   : > { %835 = vmatprep.subr.bf16.mxu0 %v834_v45 }
 0x22c   : > { %837 = vmatpush1.bf16.msra.mxu0 %v836_v54 }
 0x22d   : > { %839 = vmatprep.subr.bf16.mxu0 %v838_v55 }
 0x230   : > { %841 = vmatpush1.bf16.msra.mxu0 %v840_v60 }
 0x233   : > { %733 = vmatmul.mubr.msk.f32.vlgmr.msra.gmra.mrb[0].mxu0 %vm490_vm10, %v491_v62 }
 0x306   : > { %v591_v63 = vpop.f32.mrb[0].mxu0 }
 0x307   : > { %596 = vst [vmem:[%s1094_s10] sm:$0xff] %v591_v63  ;;  %v593_v0 = vpop.f32.mrb[1].mxu0 }
 0x308   : > { %597 = vst [vmem:[%s1094_s10 + $0x8] sm:$0xff] %v593_v0 }
 0x309 PF: > { %s15_s19 = sadd.s32 1, %s970_s19   ;;  %s1239_s15 = smov %s962_s17 }
 0x30a   : > { %p12_p12 = scmp.ge.s32.totalorder %s15_s19, 6   ;;  %s1240_s16 = smov %s966_s18 }
 0x30b   : > { %s1241_s17 = smov %s1244_s21  ;;  %s1242_s18 = smov %s1248_s22 }
 0x30c   :  { %14 = sbr.rel (!%p12_p12) target bundleno = 3 (0x3), region = 85 }
 0x313   :  { %627 = vsyncpa [#allocation4], 1 }
 0x314   :  { %629 = vsyncpa [#allocation4 + $0x1], 1 }

// kernel: pyramid_pooling_forward.1
= control target key start
LH: loop header
LB: loop body
LE: loop exit
PB: predicated region body
PF: predicated region fallthrough
CT: control target
= control target key end

     0   :  { %9 = vsyncpa [#allocation4], 0  ;;  %s1005_s15 = smov 0   ;;  %s1007_s16 = smov 0   ;;  %s1226_s0 = inlined_call_operand.vmem [shape: f32[2,8,256], index: 0, kind: input, shape index: {}]   ;;  %s1227_s1 = inlined_call_operand.vmem [shape: f32[1,8,8], index: 1, kind: input, shape index: {}]   ;;  %s1228_s2 = inlined_call_operand.vmem [shape: f32[256,128], index: 2, kind: input, shape index: {}]   ;;  %s1229_s3 = inlined_call_operand.hbm [shape: f32[128,256], index: 3, kind: input, shape index: {}]   ;;  %s1230_s4 = inlined_call_operand.vmem [shape: f32[2,16,256], index: 4, kind: output, shape index: {}]  }
   0x1   :  { %s1009_s17 = smov 0   ;;  %s1011_s18 = smov 0  }
   0x2   :  { %s1013_s19 = smov 0  }
   0x3 LB: > { %s710_s20 = sadd.s32 4294967295, %s970_s19   ;;  %s24_s21 = sadd.s32 1, %s962_s17  ;;  %s970_s19 = sphi %s1013_s19, %s15_s19   ;;  %s966_s18 = sphi %s1011_s18, %s1242_s18   ;;  %s962_s17 = sphi %s1009_s17, %s1241_s17   ;;  %s958_s16 = sphi %s1007_s16, %s1240_s16   ;;  %s954_s15 = sphi %s1005_s15, %s1239_s15  }
   0x4   : > { %p25_p0 = scmp.ge.s32.totalorder %s24_s21, 2  ;;  %s27_s22 = sadd.s32 1, %s966_s18 }
   0x5   : > { %p712_p1 = scmp.ge.s32.totalorder %s970_s19, 1  ;;  %p155_p2 = scmp.lt.s32.totalorder %s970_s19, 5 }
   0x6   : > { %s1244_s21 = smov (%p25_p0, %s24_s21), 0  ;;  %s1246_s22 = smov (!%p25_p0, %s27_s22), %s966_s18 }
   0x7   : > { %p1038_p3 = pnand %p712_p1, %p155_p2  ;;  %p29_p4 = scmp.ge.s32.totalorder %s1246_s22, 2 }
   0x8   : > { %p1042_p5 = scmp.eq.s32.totalorder %s710_s20, 0  ;;  %s972_s25 = smov [#allocation3]  }
   0x9   : > { %s1234_s23 = scalar_select %p1038_p3, 1, 0 }
   0xa   : > { %s1235_s24 = scalar_select %p1042_p5, 1, 0 }
   0xb   : > { %p846_p6 = pneg %p1038_p3  ;;  %s1248_s22 = smov (%p29_p4, %s1246_s22), 0 }
   0xc   : > { %s173_s26 = sshll.u32 %s972_s25, 4  ;;  %s900_s30 = scalar_lea.hbm %s1229_s3, 4096  ;;  %s174_s26 = int_to_ptr.vmem [resolvable:$true] %s173_s26 }
   0xd   : > { %p1052_p7 = pnand %p1042_p5, %p846_p6  ;;  %p901_p8 = scmp.ne.s32.totalorder %s1229_s3, %s900_s30 }
   0xe   : > { %p907_p12 = scmp.lt.u32.totalorder %s900_s30, %s1229_s3 }
   0xf   : > { %p902_p9 = pneg %p1052_p7 }
  0x11   : > { %p903_p10 = pnand %p902_p9, %p901_p8 }
  0x13   : > { %p904_p11 = pneg %p903_p10 }
  0x15   : > { %p909_p13 = pnand %p907_p12, %p904_p11 }
  0x17   : > { %912 = shalt.err (!%p909_p13)
}
  0x18   : > { %s913_s9 = scalar_lea.vmem %s174_s26, 4096  ;;  %p921_p4 = scmp.lt.s32.totalorder %s174_s26, %s174_s26 }
  0x19   : > { %p914_p0 = scmp.ne.s32.totalorder %s174_s26, %s913_s9  ;;  %p922_p6 = scmp.lt.s32.totalorder %s913_s9, %s913_s9 }
  0x1b   : > { %p916_p1 = pnand %p914_p0, %p902_p9  ;;  %p923_p5 = por %p922_p6, %p921_p4 }
  0x1d   : > { %p917_p2 = pneg %p916_p1 }
  0x1f   : > { %p924_p3 = pnand %p923_p5, %p917_p2 }
  0x21   : > { %927 = shalt.err (!%p924_p3)
}
  0x22   : > { %s973_s10 = smov 256   ;;  %s974_s11 = smov 16  }
  0x23   : > { %849 = dma.hbm_to_vmem [thread:$0]  (!%p1052_p7), %s1229_s3, 4096, %s174_s26, [#allocation4], %s973_s10, %s973_s10, %s974_s11  }
  0x24   : > { %p1237_p8 = scmp.ne.s32.totalorder %s1234_s23, 0 }
  0x25   : > { %p1238_p10 = scmp.ne.s32.totalorder (!%p1237_p8), %s1235_s24, 0 }
  0x26   : > { %205 = sbr.rel (%p1237_p8) target bundleno = 777 (0x309), region = 36 }
  0x2d   : > { %949 = dma.done.wait (%p1238_p10), [#allocation4], 4096  }
  0x2e   : > { %951 = vsyncadd (%p1238_p10), [#allocation4], 4294963200  ;;  %p241_p3 = scmp.lt.s32.totalorder %s954_s15, 0  ;;  %p243_p5 = scmp.lt.s32.totalorder %s958_s16, 1 }
  0x2f   : > { %p256_p7 = scmp.lt.s32.totalorder %s954_s15, 1  ;;  %p726_p9 = scmp.ne.s32.totalorder %s954_s15, 0 }
  0x30   : > { %s242_s14 = scalar_select %p241_p3, %s954_s15, 0 }
  0x31   : > { %s1250_s16 = smov (!%p243_p5, %s958_s16), 1  ;;  %v975_v0 = vmov (!%p726_p9), 0.0  }
  0x32   : > { %s1252_s14 = smov (!%p241_p3, %s242_s14), 0  ;;  %s721_s20 = sshll.u32 %s1250_s16, 1  ;;  %267 = vst [vmem:[#allocation2] sm:$0xff] (!%p726_p9), %v975_v0 }
  0x33   : > { %s720_s23 = sshll.u32 %s1252_s14, 1  ;;  %s724_s29 = sshll.u32 %s1250_s16, 2 }
  0x34   : > { %s249_s25 = sadd.s32 %s721_s20, %s720_s23 }
  0x35   : > { %s722_s26 = sshll.u32 %s249_s25, 3 }
  0x36   : > { %s1086_s28 = scalar_lea.vmem %s1226_s0, %s722_s26  ;;  %266 = sbr.rel (%p726_p9) target bundleno = 61 (0x3d), region = 44 }
  0x37   : > { %s257_s30 = scalar_select %p256_p7, %s954_s15, 1 }
  0x39   : > { %s723_s5 = sshll.u32 %s257_s30, 1 }
  0x3a   : > { %s260_s6 = sadd.s32 %s724_s29, %s723_s5 }
  0x3b   : > { %s725_s7 = sshll.u32 %s260_s6, 3 }
  0x3c   : > { %s1094_s10 = scalar_lea.vmem %s1230_s4, %s725_s7 }
  0x3d PF: > { %p727_p11 = scmp.ge.s32.totalorder %s954_s15, 1 }
  0x3e   : > { %v292_v1 = vld [vmem:[%s1228_s2 + $0x80] sm:$0xff] (!%p727_p11)  ;;  %v293_v2 = vld [vmem:[%s1228_s2 + $0x88] sm:$0xff] (!%p727_p11)  ;;  %v294_v6 = vld [vmem:[%s1228_s2 + $0x90] sm:$0xff] (!%p727_p11)  ;;  %v976_v51 = vmov (!%p727_p11), 0.0   ;;  %vm977_vm0 = vmmov (!%p727_p11), 0   ;;  %s728_s26 = sshll.u32 (!%p727_p11), %s954_s15, 3 }
  0x3f   : > { %271 = sbr.rel (%p727_p11) target bundleno = 528 (0x210), region = 48  ;;  %v276_v3 = vld [vmem:[%s1228_s2] sm:$0xff] (!%p727_p11)  ;;  %v778_v4 = vpack.c.bf16 (!%p727_p11), %v293_v2, %v292_v1  ;;  %v277_v5 = vld [vmem:[%s1228_s2 + $0x8] sm:$0xff] (!%p727_p11)  ;;  %v295_v7 = vld [vmem:[%s1228_s2 + $0x98] sm:$0xff] (!%p727_p11)  ;;  %773 = vmatprep.subr.mxu1 (!%p727_p11), %v976_v51  ;;  %775 = vmatprep.mubr.msk.f32.mxu1 (!%p727_p11), %vm977_vm0, %v976_v51  ;;  %s379_s29 = scalar_lea.vmem (!%p727_p11), %s1227_s1, %s728_s26  ;;  %vm382_vm1 = vcmask (!%p727_p11), 64512  }
  0x40   : > { %v780_v8 = vpack.c.bf16 (!%p727_p11), %v277_v5, %v276_v3  ;;  %v782_v9 = vpack.c.bf16 (!%p727_p11), %v295_v7, %v294_v6  ;;  %v278_v10 = vld [vmem:[%s1228_s2 + $0x10] sm:$0xff] (!%p727_p11)  ;;  %v279_v11 = vld [vmem:[%s1228_s2 + $0x18] sm:$0xff] (!%p727_p11)  ;;  %v296_v12 = vld [vmem:[%s1228_s2 + $0xa0] sm:$0xff] (!%p727_p11) }
  0x41   : > { %779 = vmatprep.subr.bf16.mxu0 (!%p727_p11), %v778_v4  ;;  %v297_v13 = vld [vmem:[%s1228_s2 + $0xa8] sm:$0xff] (!%p727_p11)  ;;  %v784_v14 = vpack.c.bf16 (!%p727_p11), %v279_v11, %v278_v10  ;;  %v280_v16 = vld [vmem:[%s1228_s2 + $0x20] sm:$0xff] (!%p727_p11)  ;;  %v298_v18 = vld [vmem:[%s1228_s2 + $0xb0] sm:$0xff] (!%p727_p11) }
  0x42   : > { %781 = vmatpush3.bf16.msra.mxu0 (!%p727_p11), %v780_v8  ;;  %v786_v15 = vpack.c.bf16 (!%p727_p11), %v297_v13, %v296_v12  ;;  %v281_v17 = vld [vmem:[%s1228_s2 + $0x28] sm:$0xff] (!%p727_p11)  ;;  %v299_v19 = vld [vmem:[%s1228_s2 + $0xb8] sm:$0xff] (!%p727_p11)  ;;  %v282_v22 = vld [vmem:[%s1228_s2 + $0x30] sm:$0xff] (!%p727_p11) }
  0x43   : > { %783 = vmatprep.subr.bf16.mxu0 (!%p727_p11), %v782_v9  ;;  %v788_v20 = vpack.c.bf16 (!%p727_p11), %v281_v17, %v280_v16  ;;  %v790_v21 = vpack.c.bf16 (!%p727_p11), %v299_v19, %v298_v18  ;;  %v283_v23 = vld [vmem:[%s1228_s2 + $0x38] sm:$0xff] (!%p727_p11)  ;;  %v300_v24 = vld [vmem:[%s1228_s2 + $0xc0] sm:$0xff] (!%p727_p11)  ;;  %v301_v25 = vld [vmem:[%s1228_s2 + $0xc8] sm:$0xff] (!%p727_p11) }
  0x44   : > { %v273_v26 = vld [vmem:[%s1086_s28 + $0x8] sm:$0xff] (!%p727_p11)  ;;  %v272_v27 = vld [vmem:[%s1086_s28] sm:$0xff] (!%p727_p11)  ;;  %v792_v28 = vpack.c.bf16 (!%p727_p11), %v283_v23, %v282_v22  ;;  %v794_v29 = vpack.c.bf16 (!%p727_p11), %v301_v25, %v300_v24  ;;  %v302_v32 = vld [vmem:[%s1228_s2 + $0xd0] sm:$0xff] (!%p727_p11) }
  0x45   : > { %275 = vst [vmem:[%s1094_s10 + $0x8] sm:$0xff] (!%p727_p11), %v273_v26  ;;  %372 = vmatprep.mubr.f32.mxu0 (!%p727_p11), %v273_v26  ;;  %274 = vst [vmem:[%s1094_s10] sm:$0xff] (!%p727_p11), %v272_v27  ;;  %v284_v30 = vld [vmem:[%s1228_s2 + $0x40] sm:$0xff] (!%p727_p11)  ;;  %v285_v31 = vld [vmem:[%s1228_s2 + $0x48] sm:$0xff] (!%p727_p11) }
  0x46   : > { %785 = vmatpush3.bf16.msra.mxu0 %v784_v14  ;;  %v303_v33 = vld [vmem:[%s1228_s2 + $0xd8] sm:$0xff]  ;;  %v796_v34 = vpack.c.bf16 %v285_v31, %v284_v30  ;;  %v286_v36 = vld [vmem:[%s1228_s2 + $0x50] sm:$0xff]  ;;  %v304_v38 = vld [vmem:[%s1228_s2 + $0xe0] sm:$0xff] }
  0x47   : > { %787 = vmatprep.subr.bf16.mxu0 %v786_v15  ;;  %v798_v35 = vpack.c.bf16 %v303_v33, %v302_v32  ;;  %v287_v37 = vld [vmem:[%s1228_s2 + $0x58] sm:$0xff]  ;;  %v305_v39 = vld [vmem:[%s1228_s2 + $0xe8] sm:$0xff]  ;;  %v288_v42 = vld [vmem:[%s1228_s2 + $0x60] sm:$0xff] }
  0x48   : > { %v800_v40 = vpack.c.bf16 %v287_v37, %v286_v36  ;;  %v802_v41 = vpack.c.bf16 %v305_v39, %v304_v38  ;;  %v289_v43 = vld [vmem:[%s1228_s2 + $0x68] sm:$0xff]  ;;  %v306_v44 = vld [vmem:[%s1228_s2 + $0xf0] sm:$0xff]  ;;  %v307_v45 = vld [vmem:[%s1228_s2 + $0xf8] sm:$0xff] }
  0x49   : > { %v804_v46 = vpack.c.bf16 %v289_v43, %v288_v42  ;;  %v806_v47 = vpack.c.bf16 %v307_v45, %v306_v44  ;;  %v290_v48 = vld [vmem:[%s1228_s2 + $0x70] sm:$0xff]  ;;  %v291_v49 = vld [vmem:[%s1228_s2 + $0x78] sm:$0xff]  ;;  %v380_v55 = vld [vmem:[%s379_s29] sm:$0xff] }
  0x4a   : > { %789 = vmatpush3.bf16.msra.mxu0 %v788_v20  ;;  %v808_v50 = vpack.c.bf16 %v291_v49, %v290_v48  ;;  %v381_v56 = vld [vmem:[#allocation2] sm:$0xff] }
  0x4b   : > { %791 = vmatprep.subr.bf16.mxu0 %v790_v21 }
  0x4e   : > { %793 = vmatpush3.bf16.msra.mxu0 %v792_v28 }
  0x4f   : > { %795 = vmatprep.subr.bf16.mxu0 %v794_v29 }
  0x52   : > { %797 = vmatpush3.bf16.msra.mxu0 %v796_v34 }
  0x53   : > { %799 = vmatprep.subr.bf16.mxu0 %v798_v35 }
  0x56   : > { %801 = vmatpush3.bf16.msra.mxu0 %v800_v40 }
  0x57   : > { %803 = vmatprep.subr.bf16.mxu0 %v802_v41 }
  0x5a   : > { %805 = vmatpush3.bf16.msra.mxu0 %v804_v46 }
  0x5b   : > { %807 = vmatprep.subr.bf16.mxu0 %v806_v47 }
  0x5e   : > { %809 = vmatpush3.bf16.msra.mxu0 %v808_v50 }
  0x61   : > { %373 = vmatmul.mubr.f32.vlgmr.msra.gmra.mrb[0].mxu0 %v272_v27 }
 0x134   : > { %v768_v52 = vpop.f32.mrb[0].mxu0 }
 0x135   : > { %v769_v53 = vpop.f32.mrb[1].mxu0 }
 0x136   : > { %v770_v54 = vadd.f32 %v769_v53, %v768_v52 }
 0x138   : > { %774 = vmatpush3.msra.mxu1 %v770_v54 }
 0x139   : > { %776 = vmatmul.mubr.msk.f32.vlgmr.msra.gmra.mrb[0].mxu1 %vm382_vm1, %v380_v55 }
 0x20c   : > { %v452_v57 = vpop.f32.mrb[0].mxu1 }
 0x20d   : > { %v456_v58 = vadd.f32 %v452_v57, %v381_v56  ;;  %v777_v59 = vpop.f32.mrb[1].mxu1 }
 0x20f   : > { %457 = vst [vmem:[#allocation2] sm:$0xff] %v456_v58 }
 0x210 PF: > { %461 = sbr.rel (%p256_p7) target bundleno = 777 (0x309), region = 52  ;;  %v494_v60 = vld [vmem:[#allocation3 + $0x8] sm:$0xff] (!%p256_p7)  ;;  %v496_v61 = vld [vmem:[#allocation3 + $0x18] sm:$0xff] (!%p256_p7)  ;;  %v493_v62 = vld [vmem:[#allocation3] sm:$0xff] (!%p256_p7)  ;;  %v978_v3 = vmov (!%p256_p7), 0.0   ;;  %s731_s30 = sadd.s32 (!%p256_p7), 4294967295, %s954_s15  ;;  %v466_v10 = vlaneseq (!%p256_p7) }
 0x211   : > { %v810_v63 = vpack.c.bf16 (!%p256_p7), %v496_v61, %v494_v60  ;;  %v495_v0 = vld [vmem:[#allocation3 + $0x10] sm:$0xff] (!%p256_p7)  ;;  %v498_v1 = vld [vmem:[#allocation3 + $0x28] sm:$0xff] (!%p256_p7)  ;;  %v500_v2 = vld [vmem:[#allocation3 + $0x38] sm:$0xff] (!%p256_p7)  ;;  %589 = vmatprep.mubr.f32.mxu0 (!%p256_p7), %v978_v3  ;;  %s1205_s5 = sshll.u32 (!%p256_p7), %s731_s30, 3  ;;  %v979_v39 = vmov (!%p256_p7), 0  }
 0x212   : > { %v812_v4 = vpack.c.bf16 (!%p256_p7), %v495_v0, %v493_v62  ;;  %v814_v5 = vpack.c.bf16 (!%p256_p7), %v500_v2, %v498_v1  ;;  %v497_v6 = vld [vmem:[#allocation3 + $0x20] sm:$0xff] (!%p256_p7)  ;;  %v499_v7 = vld [vmem:[#allocation3 + $0x30] sm:$0xff] (!%p256_p7)  ;;  %v502_v8 = vld [vmem:[#allocation3 + $0x48] sm:$0xff] (!%p256_p7)  ;;  %v467_v17 = vshrl.u32 (!%p256_p7), %v466_v10, 7  ;;  %v468_v19 = vstv (!%p256_p7), %s1205_s5  ;;  %s464_s15 = scalar_lea.vmem (!%p256_p7), [#allocation2], %s1205_s5 }
 0x213   : > { %811 = vmatprep.subr.bf16.mxu0 (!%p256_p7), %v810_v63  ;;  %v504_v9 = vld [vmem:[#allocation3 + $0x58] sm:$0xff] (!%p256_p7)  ;;  %v816_v11 = vpack.c.bf16 (!%p256_p7), %v499_v7, %v497_v6  ;;  %v501_v13 = vld [vmem:[#allocation3 + $0x40] sm:$0xff] (!%p256_p7)  ;;  %v503_v14 = vld [vmem:[#allocation3 + $0x50] sm:$0xff] (!%p256_p7)  ;;  %v471_v26 = vand.u32 (!%p256_p7), 127, %v466_v10 }
 0x214   : > { %813 = vmatpush1.bf16.msra.mxu0 (!%p256_p7), %v812_v4  ;;  %v818_v12 = vpack.c.bf16 (!%p256_p7), %v504_v9, %v502_v8  ;;  %v506_v15 = vld [vmem:[#allocation3 + $0x68] sm:$0xff] (!%p256_p7)  ;;  %v508_v16 = vld [vmem:[#allocation3 + $0x78] sm:$0xff] (!%p256_p7)  ;;  %v820_v18 = vpack.c.bf16 (!%p256_p7), %v503_v14, %v501_v13  ;;  %v505_v21 = vld [vmem:[#allocation3 + $0x60] sm:$0xff] (!%p256_p7)  ;;  %v469_v25 = vadd.s32 (!%p256_p7), %v468_v19, %v467_v17 }
 0x215   : > { %815 = vmatprep.subr.bf16.mxu0 (!%p256_p7), %v814_v5  ;;  %v822_v20 = vpack.c.bf16 (!%p256_p7), %v508_v16, %v506_v15  ;;  %v507_v22 = vld [vmem:[#allocation3 + $0x70] sm:$0xff] (!%p256_p7)  ;;  %v510_v23 = vld [vmem:[#allocation3 + $0x88] sm:$0xff] (!%p256_p7)  ;;  %v512_v24 = vld [vmem:[#allocation3 + $0x98] sm:$0xff] (!%p256_p7)  ;;  %vm480_vm4 = vcmp.ge.s32.totalorder (!%p256_p7), %v471_v26, 1  ;;  %vm482_vm5 = vcmp.ge.s32.totalorder (!%p256_p7), %v471_v26, 5  ;;  %vm485_vm7 = vcmp.ge.s32.totalorder (!%p256_p7), %v471_v26, 14 }
 0x216   : > { %v824_v27 = vpack.c.bf16 (!%p256_p7), %v507_v22, %v505_v21  ;;  %v826_v28 = vpack.c.bf16 (!%p256_p7), %v512_v24, %v510_v23  ;;  %v509_v29 = vld [vmem:[#allocation3 + $0x80] sm:$0xff] (!%p256_p7)  ;;  %v511_v30 = vld [vmem:[#allocation3 + $0x90] sm:$0xff] (!%p256_p7)  ;;  %v514_v31 = vld [vmem:[#allocation3 + $0xa8] sm:$0xff] (!%p256_p7)  ;;  %vm472_vm2 = vcmp.ge.s32.totalorder (!%p256_p7), %v469_v25, 2  ;;  %vm474_vm3 = vcmp.ge.s32.totalorder (!%p256_p7), %v469_v25, 4 }
 0x217   : > { %v516_v32 = vld [vmem:[#allocation3 + $0xb8] sm:$0xff]  ;;  %v828_v33 = vpack.c.bf16 %v511_v30, %v509_v29  ;;  %v513_v35 = vld [vmem:[#allocation3 + $0xa0] sm:$0xff]  ;;  %v515_v36 = vld [vmem:[#allocation3 + $0xb0] sm:$0xff]  ;;  %v473_v40 = vsel %vm472_vm2, 1, %v979_v39  ;;  %v475_v41 = vsel %vm474_vm3, 1, %v979_v39  ;;  %v481_v42 = vsel %vm480_vm4, 1, %v979_v39 }
 0x218   : > { %817 = vmatpush1.bf16.msra.mxu0 %v816_v11  ;;  %v830_v34 = vpack.c.bf16 %v516_v32, %v514_v31  ;;  %v518_v37 = vld [vmem:[#allocation3 + $0xc8] sm:$0xff]  ;;  %v520_v38 = vld [vmem:[#allocation3 + $0xd8] sm:$0xff]  ;;  %v483_v43 = vsel %vm482_vm5, 1, %v979_v39  ;;  %vm477_vm6 = vcmp.ge.s32.totalorder %v469_v25, 6  ;;  %v832_v44 = vpack.c.bf16 %v515_v36, %v513_v35  ;;  %v517_v46 = vld [vmem:[#allocation3 + $0xc0] sm:$0xff] }
 0x219   : > { %819 = vmatprep.subr.bf16.mxu0 %v818_v12  ;;  %v834_v45 = vpack.c.bf16 %v520_v38, %v518_v37  ;;  %v519_v47 = vld [vmem:[#allocation3 + $0xd0] sm:$0xff]  ;;  %v476_v48 = vadd.s32 %v475_v41, %v473_v40  ;;  %v484_v49 = vadd.s32 %v483_v43, %v481_v42  ;;  %v522_v50 = vld [vmem:[#allocation3 + $0xe8] sm:$0xff]  ;;  %v524_v51 = vld [vmem:[#allocation3 + $0xf8] sm:$0xff]  ;;  %v478_v52 = vsel %vm477_vm6, 1, %v979_v39 }
 0x21a   : > { %v486_v53 = vsel %vm485_vm7, 1, %v979_v39  ;;  %v836_v54 = vpack.c.bf16 %v519_v47, %v517_v46  ;;  %v838_v55 = vpack.c.bf16 %v524_v51, %v522_v50  ;;  %v521_v56 = vld [vmem:[#allocation3 + $0xe0] sm:$0xff]  ;;  %v523_v57 = vld [vmem:[#allocation3 + $0xf0] sm:$0xff]  ;;  %v465_v61 = vld [vmem:[%s464_s15] sm:$0xff]  ;;  %vm489_vm9 = vcmp.lt.s32.totalorder %v471_v26, 50 }
 0x21b   : > { %v479_v58 = vadd.s32 %v478_v52, %v476_v48  ;;  %v487_v59 = vadd.s32 %v486_v53, %v484_v49  ;;  %v840_v60 = vpack.c.bf16 %v523_v57, %v521_v56  ;;  %v491_v62 = vmax.f32 %v465_v61, 0.0 }
 0x21c   : > { %821 = vmatpush1.bf16.msra.mxu0 %v820_v18 }
 0x21d   : > { %823 = vmatprep.subr.bf16.mxu0 %v822_v20  ;;  %vm488_vm8 = vcmp.eq.s32.totalorder %v479_v58, %v487_v59 }
 0x21e   : > { %vm490_vm10 = vmand %vm488_vm8, %vm489_vm9 }
 0x220   : > { %825 = vmatpush1.bf16.msra.mxu0 %v824_v27 }
 0x221   : > { %827 = vmatprep.subr.bf16.mxu0 %v826_v28 }
 0x224   : > { %829 = vmatpush1.bf16.msra.mxu0 %v828_v33 }
 0x225   : > { %831 = vmatprep.subr.bf16.mxu0 %v830_v34 }
 0x228   : > { %833 = vmatpush1.bf16.msra.mxu0 %v832_v44 }
 0x229   : > { %835 = vmatprep.subr.bf16.mxu0 %v834_v45 }
 0x22c   : > { %837 = vmatpush1.bf16.msra.mxu0 %v836_v54 }
 0x22d   : > { %839 = vmatprep.subr.bf16.mxu0 %v838_v55 }
 0x230   : > { %841 = vmatpush1.bf16.msra.mxu0 %v840_v60 }
 0x233   : > { %733 = vmatmul.mubr.msk.f32.vlgmr.msra.gmra.mrb[0].mxu0 %vm490_vm10, %v491_v62 }
 0x306   : > { %v591_v63 = vpop.f32.mrb[0].mxu0 }
 0x307   : > { %596 = vst [vmem:[%s1094_s10] sm:$0xff] %v591_v63  ;;  %v593_v0 = vpop.f32.mrb[1].mxu0 }
 0x308   : > { %597 = vst [vmem:[%s1094_s10 + $0x8] sm:$0xff] %v593_v0 }
 0x309 PF: > { %s15_s19 = sadd.s32 1, %s970_s19   ;;  %s1239_s15 = smov %s962_s17 }
 0x30a   : > { %p12_p12 = scmp.ge.s32.totalorder %s15_s19, 6   ;;  %s1240_s16 = smov %s966_s18 }
 0x30b   : > { %s1241_s17 = smov %s1244_s21  ;;  %s1242_s18 = smov %s1248_s22 }
 0x30c   :  { %14 = sbr.rel (!%p12_p12) target bundleno = 3 (0x3), region = 85 }
 0x313   :  { %627 = vsyncpa [#allocation4], 1 }
 0x314   :  { %629 = vsyncpa [#allocation4 + $0x1], 1 }

</bundles_post_ra>
